<compile_context>
chip_gen: v6e
topology: v6e:2x2x1
jax: 0.10.0
libtpu: 0.0.40
codegen_flags: <defaults>
</compile_context>

<pallas_src>
import jax
import jax.numpy as jnp
from jax.experimental import pallas as pl
from jax.experimental.pallas import tpu as pltpu

_LANES = 128
_MiB = 1024 * 1024


def _swish_kernel(x_ref, o_ref):
    x = x_ref[...]
    # exp/recip go to the EUP (its own VLIW slot), multiply to the VPU; the
    # kernel is pure HBM streaming so neither slot binds.
    o_ref[...] = x * jax.nn.sigmoid(x)


def _ceil_to(v, m):
    return -(-v // m) * m


def _chip_config():
    """Per-generation (block_bytes, vmem_limit_bytes, num_tensorcores)."""
    try:
        kind = jax.devices()[0].device_kind.lower()
    except Exception:
        kind = ""
    if "7" in kind:
        # v7x: ~3.2 TB/s HBM, 64 MiB physical VMEM, 2 TCs per chip.
        # 8 MiB blocks -> 32 MiB double-buffered in+out, so raise the scoped
        # limit (default 32 MiB) to 48 MiB to leave headroom.
        return 8 * _MiB, 48 * _MiB, 2
    if "v6" in kind:
        # v6e: 4 MiB blocks = 16 MiB double-buffered, under the 32 MiB default.
        return 4 * _MiB, None, 1
    if "v4" in kind or "v5p" in kind:
        # Megacore chips (2 TCs); keep conservative blocks.
        return 2 * _MiB, None, 2
    # v5e and unknown chips: 16 MiB scoped-VMEM default -> stay small and safe.
    return 2 * _MiB, None, 1


def _swish_2d(x2d, *, block_bytes, vmem_limit, num_tc):
    """Run the kernel over a lane-dense (n_rows, 128) slab."""
    n_rows = x2d.shape[0]
    dtype = x2d.dtype
    itemsize = jnp.dtype(dtype).itemsize
    # Sublane packing granularity: 8 rows for 4-byte dtypes, 16 for 2-byte,
    # 32 for 1-byte (sub-32-bit dtypes pack along sublanes).
    sub = max(8, 32 // max(itemsize, 1))

    # Row-tile sizing: ~block_bytes per block, multiple of the sublane
    # granularity; in + out double-buffered => 4 * block_bytes of VMEM.
    tr_target = max(sub, (block_bytes // (_LANES * itemsize)) // sub * sub)
    if n_rows <= tr_target:
        if num_tc > 1 and n_rows >= 2 * sub:
            # Only split small arrays when there are 2 TensorCores to feed
            # (the "parallel" grid axis shards across them); on 1-TC chips a
            # split is pure per-step overhead.
            half = -(-n_rows // 2)
            tr = _ceil_to(half, sub)
        else:
            tr = n_rows  # full-extent block (legal even if not 8-aligned)
    else:
        tr = tr_target
    grid = (pl.cdiv(n_rows, tr),)  # partial last block is masked by Pallas

    total = n_rows * _LANES
    cost = pl.CostEstimate(
        flops=2 * total,              # one mul + ~one add per element
        transcendentals=total,        # one exp per element
        bytes_accessed=2 * total * itemsize,  # read + write, no reuse
    )

    # TODO(synk): if xprof ever shows exposed DMA at step boundaries on v7x,
    # add pipeline_mode=pl.Buffered(3) to these BlockSpecs (VMEM headroom ok).
    return pl.pallas_call(
        _swish_kernel,
        out_shape=jax.ShapeDtypeStruct((n_rows, _LANES), dtype),
        grid_spec=pltpu.PrefetchScalarGridSpec(
            num_scalar_prefetch=0,
            grid=grid,
            in_specs=[pl.BlockSpec((tr, _LANES), lambda i: (i, 0))],
            out_specs=pl.BlockSpec((tr, _LANES), lambda i: (i, 0)),
        ),
        compiler_params=pltpu.CompilerParams(
            dimension_semantics=("parallel",),
            vmem_limit_bytes=vmem_limit,
        ),
        cost_estimate=cost,
    )(x2d)


def swish(x):
    """Elementwise Swish, identical forward semantics to the torch module.

    (The torch module's `inplace=True` mutation has no JAX equivalent; the
    functional result is identical.)
    """
    orig_shape = x.shape
    dtype = x.dtype
    total = x.size
    if total == 0:
        return x

    block_bytes, vmem_limit, num_tc = _chip_config()
    kw = dict(block_bytes=block_bytes, vmem_limit=vmem_limit, num_tc=num_tc)

    flat = x.reshape(-1)
    rem = total % _LANES
    n_full = total // _LANES

    if rem == 0:
        # Common aligned case: zero pad/slice passes.
        out2d = _swish_2d(flat.reshape(n_full, _LANES), **kw)
        return out2d.reshape(orig_shape)

    if n_full == 0:
        # Tiny array (< 128 elements): pad one row; negligible.
        padded = jnp.pad(flat, (0, _LANES - rem))
        out2d = _swish_2d(padded.reshape(1, _LANES), **kw)
        return out2d.reshape(-1)[:total].reshape(orig_shape)

    # Ragged: kernel over the aligned prefix, <128-element tail in plain jnp.
    # Avoids the whole-array jnp.pad + output-slice HBM passes.
    # TODO(synk): an in-kernel masked tail (scalar-prefetch `total` + masked
    # store) would also fuse away the concatenate pass for huge ragged inputs.
    prefix = flat[: n_full * _LANES]
    tail = flat[n_full * _LANES:]
    out_prefix = _swish_2d(prefix.reshape(n_full, _LANES), **kw).reshape(-1)
    out_tail = tail * jax.nn.sigmoid(tail)
    return jnp.concatenate([out_prefix, out_tail]).reshape(orig_shape)


if __name__ == "__main__":
    key = jax.random.PRNGKey(0)
    # Small NCHW input consistent with the module's typical conv usage.
    x = jax.random.normal(key, (2, 4, 16, 16), dtype=jnp.float32)

    y = swish(x)
    jax.block_until_ready(y)

    # correctness check against plain-JAX reference
    ref = x * jax.nn.sigmoid(x)
    assert y.shape == x.shape and y.dtype == x.dtype
    assert jnp.allclose(y, ref, atol=1e-6, rtol=1e-6)

    # ragged, < 128 elements (pad-one-row path)
    x2 = jax.random.normal(jax.random.PRNGKey(1), (3, 5, 7), dtype=jnp.float32)
    y2 = swish(x2)
    jax.block_until_ready(y2)
    assert jnp.allclose(y2, x2 * jax.nn.sigmoid(x2), atol=1e-6, rtol=1e-6)

    # ragged, > 128 elements (prefix-kernel + jnp-tail path)
    x3 = jax.random.normal(jax.random.PRNGKey(2), (3, 130), dtype=jnp.float32)
    y3 = swish(x3)
    jax.block_until_ready(y3)
    assert jnp.allclose(y3, x3 * jax.nn.sigmoid(x3), atol=1e-6, rtol=1e-6)

    # bf16: computed in the input dtype (matches x * sigmoid(x) in bf16)
    x4 = jax.random.normal(jax.random.PRNGKey(3), (2, 4, 16, 16)).astype(jnp.bfloat16)
    y4 = swish(x4)
    jax.block_until_ready(y4)
    ref4 = x4 * jax.nn.sigmoid(x4)
    assert y4.dtype == jnp.bfloat16
    assert jnp.allclose(y4.astype(jnp.float32), ref4.astype(jnp.float32),
                        atol=2e-2, rtol=2e-2)

    print("KERNEL_OK")
</pallas_src>

<mosaic_0001>
module attributes {stable_mosaic.version = 11 : i64} {
  func.func @_swish_kernel(%arg0: i32, %arg1: memref<16x128xf32, #tpu.memory_space<vmem>>, %arg2: memref<16x128xf32, #tpu.memory_space<vmem>>) attributes {dimension_semantics = [#tpu.dimension_semantics<parallel>], iteration_bounds = array<i64: 1>, scalar_prefetch = 0 : i64, scratch_operands = 0 : i64, tpu.core_type = #tpu.core_type<tc>, window_params = [{transform_indices = @transform_0, window_bounds = array<i64: 16, 128>}, {transform_indices = @transform_1, window_bounds = array<i64: 16, 128>}]} {
    %c0 = arith.constant 0 : index
    %c0_0 = arith.constant 0 : index
    %0 = vector.load %arg1[%c0, %c0_0] : memref<16x128xf32, #tpu.memory_space<vmem>>, vector<16x128xf32>
    %1 = arith.negf %0 : vector<16x128xf32>
    %2 = math.exp %1 : vector<16x128xf32>
    %cst = arith.constant 1.000000e+00 : f32
    %3 = vector.broadcast %cst : f32 to vector<16x128xf32>
    %4 = arith.addf %3, %2 : vector<16x128xf32>
    %5 = arith.divf %3, %4 : vector<16x128xf32>
    %6 = arith.mulf %0, %5 : vector<16x128xf32>
    %c0_1 = arith.constant 0 : index
    %c0_2 = arith.constant 0 : index
    %7 = vector.load %arg2[%c0_1, %c0_2] : memref<16x128xf32, #tpu.memory_space<vmem>>, vector<16x128xf32>
    tpu.vector_store %arg2[%c0_1, %c0_2], %6 {strides = array<i32>} : memref<16x128xf32, #tpu.memory_space<vmem>>, vector<16x128xf32>,
    return
  }
  func.func @transform_0(%arg0: i32) -> (i32, i32) {
    %c0_i32 = arith.constant 0 : i32
    %c0_i32_0 = arith.constant 0 : i32
    return %arg0, %c0_i32 : i32, i32
  }
  func.func @transform_1(%arg0: i32) -> (i32, i32) {
    %c0_i32 = arith.constant 0 : i32
    %c0_i32_0 = arith.constant 0 : i32
    return %arg0, %c0_i32 : i32, i32
  }
}

</mosaic_0001>

<bundles_post_ra>
// kernel: tpu_custom_call.1
= control target key start
LH: loop header
LB: loop body
LE: loop exit
PB: predicated region body
PF: predicated region fallthrough
CT: control target
= control target key end

     0   :  { %6 = vsyncpa [#allocation3], 0  ;;  %s142_s0 = inlined_call_operand.hbm [shape: f32[16,128], index: 0, kind: input, shape index: {}]   ;;  %s143_s1 = inlined_call_operand.hbm [shape: f32[16,128], index: 1, kind: output, shape index: {}]  }
   0x1   :  { %7 = vsyncpa [#allocation4], 0  ;;  %s116_s6 = smov [#allocation2]  }
   0x2   :  { %s13_s7 = sshll.u32 %s116_s6, 4  ;;  %s14_s7 = int_to_ptr.vmem [resolvable:$true] %s13_s7 }
   0x3   :  { %s80_s8 = scalar_lea.vmem %s14_s7, 256  ;;  %p85_p1 = scmp.lt.s32.totalorder %s14_s7, %s14_s7 }
   0x4   :  { %p81_p0 = scmp.ne.s32.totalorder %s14_s7, %s80_s8  ;;  %p86_p2 = scmp.lt.s32.totalorder %s80_s8, %s80_s8 }
   0x6   :  { %p87_p3 = por %p86_p2, %p85_p1 }
   0x8   :  { %p88_p4 = pnand %p87_p3, %p81_p0 }
   0xa   :  { %91 = shalt.err (!%p88_p4)
}
   0xb   :  { %s117_s9 = smov 128   ;;  %s118_s10 = smov 8  }
   0xc   :  { %19 = dma.hbm_to_vmem [thread:$0]  %s142_s0, 256, %s14_s7, [#allocation3], %s117_s9, %s117_s9, %s118_s10  }
   0xd   :  { %112 = dma.done.wait [#allocation3], 256  }
   0xe   :  { %113 = vsyncadd [#allocation3], 4294967040  ;;  %v23_v0 = vld [vmem:[#allocation2] sm:$0xff]  ;;  %v24_v1 = vld [vmem:[#allocation2 + $0x8] sm:$0xff]  ;;  %s119_s13 = smov [#allocation5]  }
   0xf   :  { %v58_v2 = vmul.f32 -1.442695, %v23_v0  ;;  %v59_v3 = vmul.f32 -1.442695, %v24_v1  ;;  %s46_s14 = sshll.u32 %s119_s13, 4  ;;  %s47_s14 = int_to_ptr.vmem [resolvable:$true] %s46_s14 }
  0x10   :  { %s92_s0 = scalar_lea.vmem %s47_s14, 256  ;;  %p97_p6 = scmp.lt.s32.totalorder %s47_s14, %s47_s14 }
  0x11   :  { %64 = vpow2.f32 %v58_v2  ;;  %p93_p5 = scmp.ne.s32.totalorder %s47_s14, %s92_s0  ;;  %p98_p7 = scmp.lt.s32.totalorder %s92_s0, %s92_s0 }
  0x12   :  { %66 = vpow2.f32 %v59_v3 }
  0x13   :  { %p99_p8 = por %p98_p7, %p97_p6 }
  0x15   :  { %p100_p9 = pnand %p99_p8, %p93_p5 }
  0x1e   :  { %v65_v4 = vpop.eup %64 }
  0x1f   :  { %v67_v5 = vpop.eup %66  ;;  %v31_v6 = vadd.f32 1.0, %v65_v4 }
  0x20   :  { %v32_v7 = vadd.f32 1.0, %v67_v5 }
  0x21   :  { %68 = vrcp.f32 %v31_v6 }
  0x22   :  { %70 = vrcp.f32 %v32_v7 }
  0x2e   :  { %v69_v8 = vpop.eup %68 }
  0x2f   :  { %v71_v9 = vpop.eup %70  ;;  %v37_v10 = vmul.f32 %v69_v8, %v23_v0 }
  0x30   :  { %v38_v11 = vmul.f32 %v71_v9, %v24_v1 }
  0x31   :  { %39 = vst [vmem:[#allocation5] sm:$0xff] %v37_v10 }
  0x32   :  { %40 = vst [vmem:[#allocation5 + $0x8] sm:$0xff] %v38_v11 }
  0x33   :  { %103 = shalt.err (!%p100_p9)
}
  0x34   :  { %52 = dma.vmem_to_hbm [thread:$0]  %s47_s14, 256, %s143_s1, [#allocation4], %s117_s9, %s117_s9, %s118_s10  }
  0x35   :  { %114 = dma.done.wait [#allocation4], 256  }
  0x36   :  { %115 = vsyncadd [#allocation4], 4294967040 }
  0x37   :  { %56 = vsyncpa [#allocation3], 1 }
  0x38   :  { %57 = vsyncpa [#allocation4], 1 }

</bundles_post_ra>
